<compile_context>
chip_gen: v5e
topology: v5e:2x2
jax: 0.10.0
libtpu: 0.0.40
codegen_flags: <defaults>
</compile_context>

<pallas_src>
import math

import jax
import jax.numpy as jnp
from jax import lax
from jax.experimental import pallas as pl
from jax.experimental.pallas import tpu as pltpu


def _gqa_kernel(nums_head, nums_key_value_head, head_dim, compute_dtype):
    group = nums_head // nums_key_value_head
    scale = 1.0 / math.sqrt(head_dim)

    def kernel(xq_ref, xkv_ref, wq_ref, bq_ref, wk_ref, bk_ref, wv_ref, bv_ref,
               wo_ref, bo_ref, o_ref, q_sc, m_sc, l_sc, acc_sc):
        ki = pl.program_id(2)
        n_kv = pl.num_programs(2)

        # First KV tile for this query tile: compute the (pre-scaled) Q
        # projection once and reset the online-softmax state.
        @pl.when(ki == 0)
        def _():
            xq = xq_ref[0]                                          # (TQ, H)
            q = jnp.dot(xq, wq_ref[...],
                        preferred_element_type=jnp.float32) + bq_ref[...]
            q_sc[...] = (q * scale).astype(q_sc.dtype)              # fold 1/sqrt(D)
            m_sc[...] = jnp.full_like(m_sc, -jnp.inf)
            l_sc[...] = jnp.zeros_like(l_sc)
            acc_sc[...] = jnp.zeros_like(acc_sc)

        # K/V projections for the current KV tile (bf16 inputs, f32 accumulate).
        xkv = xkv_ref[0]                                            # (TK, H)
        k = (jnp.dot(xkv, wk_ref[...], preferred_element_type=jnp.float32)
             + bk_ref[...]).astype(compute_dtype)                   # (TK, KV)
        v = (jnp.dot(xkv, wv_ref[...], preferred_element_type=jnp.float32)
             + bv_ref[...]).astype(compute_dtype)                   # (TK, KV)

        # Online softmax per query head (small static head count; per-head
        # state lives in VMEM scratch, only one (TQ, TK) score tile is live).
        for h in range(nums_head):
            g = h // group                                          # repeat_interleave map
            qh = q_sc[:, h * head_dim:(h + 1) * head_dim]           # (TQ, D)
            kh = k[:, g * head_dim:(g + 1) * head_dim]              # (TK, D)
            vh = v[:, g * head_dim:(g + 1) * head_dim]              # (TK, D)

            # Q @ K^T without materializing a transpose.
            s = lax.dot_general(qh, kh, (((1,), (1,)), ((), ())),
                                preferred_element_type=jnp.float32)  # (TQ, TK)

            m_prev = m_sc[h]                                        # (TQ, 1)
            m_new = jnp.maximum(m_prev, jnp.max(s, axis=-1, keepdims=True))
            alpha = jnp.exp(m_prev - m_new)                         # (TQ, 1)
            p = jnp.exp(s - m_new)                                  # (TQ, TK) f32

            l_sc[h] = alpha * l_sc[h] + jnp.sum(p, axis=-1, keepdims=True)
            acc_sc[h] = alpha * acc_sc[h] + jnp.dot(
                p.astype(compute_dtype), vh,
                preferred_element_type=jnp.float32)                 # (TQ, D)
            m_sc[h] = m_new

        # Last KV tile: deferred normalization (EUP reciprocal) + output
        # projection accumulated head-by-head (no concatenate).
        @pl.when(ki == n_kv - 1)
        def _():
            y = jnp.zeros(o_ref.shape[1:], jnp.float32) + bo_ref[...]   # (TQ, H)
            for h in range(nums_head):
                inv_l = pl.reciprocal(l_sc[h], approx=True)             # (TQ, 1)
                head = (acc_sc[h] * inv_l).astype(compute_dtype)        # (TQ, D)
                y = y + jnp.dot(head,
                                wo_ref[h * head_dim:(h + 1) * head_dim, :],
                                preferred_element_type=jnp.float32)
            o_ref[0] = y.astype(o_ref.dtype)

    return kernel


def gqa_forward(x, params, nums_head, nums_key_value_head, *,
                q_tile=256, kv_tile=256, compute_dtype=jnp.bfloat16):
    """x: (B, S, H). params: dict of f32 weights/biases. Returns (B, S, H)."""
    B, S, H = x.shape
    assert H % nums_head == 0 and nums_head % nums_key_value_head == 0
    head_dim = H // nums_head
    kv_dim = nums_key_value_head * head_dim

    # Sequence tiling (fall back to full S for small / non-divisible shapes).
    TQ = q_tile if (S % q_tile == 0) else S
    TK = kv_tile if (S % kv_tile == 0) else S
    grid = (B, S // TQ, S // TK)

    cdt = compute_dtype
    xc = x.astype(cdt)
    wq = params["wq"].astype(cdt)
    wk = params["wk"].astype(cdt)
    wv = params["wv"].astype(cdt)
    wo = params["wo"].astype(cdt)
    # Biases stay f32 (added to f32 accumulators), shaped (1, out) for VMEM.
    bq2 = params["bq"].reshape(1, H).astype(jnp.float32)
    bk2 = params["bk"].reshape(1, kv_dim).astype(jnp.float32)
    bv2 = params["bv"].reshape(1, kv_dim).astype(jnp.float32)
    bo2 = params["bo"].reshape(1, H).astype(jnp.float32)

    def _const_spec(shape):
        zeros = (0,) * len(shape)
        return pl.BlockSpec(shape, lambda b, qi, ki: zeros)

    kernel = _gqa_kernel(nums_head, nums_key_value_head, head_dim, cdt)

    # Rough VMEM budget (double-buffered pipeline blocks + scratch), padded to
    # lane width, with 2x headroom; clamp to a safe scoped-VMEM range.
    def nbytes(shape, dtype):
        return int(math.prod(shape)) * jnp.dtype(dtype).itemsize

    vmem_est = 2 * (
        nbytes((1, TQ, H), cdt) + nbytes((1, TK, H), cdt)
        + nbytes((1, TQ, H), x.dtype)
        + 2 * nbytes((H, H), cdt) + 2 * nbytes((H, kv_dim), cdt)
        + 2 * nbytes((8, 128), jnp.float32) * 2
    ) + (
        nbytes((TQ, H), cdt)
        + 2 * nbytes((nums_head, TQ, 128), jnp.float32)
        + nbytes((nums_head, TQ, max(head_dim, 128)), jnp.float32)
    )
    vmem_limit = int(min(max(2 * vmem_est, 16 * 1024 * 1024), 64 * 1024 * 1024))

    out = pl.pallas_call(
        kernel,
        out_shape=jax.ShapeDtypeStruct((B, S, H), x.dtype),
        grid_spec=pltpu.PrefetchScalarGridSpec(
            num_scalar_prefetch=0,
            grid=grid,
            in_specs=[
                pl.BlockSpec((1, TQ, H), lambda b, qi, ki: (b, qi, 0)),  # x (query rows)
                pl.BlockSpec((1, TK, H), lambda b, qi, ki: (b, ki, 0)),  # x (kv rows)
                _const_spec((H, H)), _const_spec((1, H)),                # wq, bq
                _const_spec((H, kv_dim)), _const_spec((1, kv_dim)),      # wk, bk
                _const_spec((H, kv_dim)), _const_spec((1, kv_dim)),      # wv, bv
                _const_spec((H, H)), _const_spec((1, H)),                # wo, bo
            ],
            out_specs=pl.BlockSpec((1, TQ, H), lambda b, qi, ki: (b, qi, 0)),
            scratch_shapes=[
                pltpu.VMEM((TQ, H), cdt),                                # scaled Q
                pltpu.VMEM((nums_head, TQ, 1), jnp.float32),             # running max
                pltpu.VMEM((nums_head, TQ, 1), jnp.float32),             # running sum
                pltpu.VMEM((nums_head, TQ, head_dim), jnp.float32),      # unnormalized acc
            ],
        ),
        compiler_params=pltpu.CompilerParams(
            dimension_semantics=("parallel", "parallel", "arbitrary"),
            vmem_limit_bytes=vmem_limit,
        ),
    )(xc, xc, wq, bq2, wk, bk2, wv, bv2, wo, bo2)
    return out


def gqa_reference(x, params, nums_head, nums_key_value_head):
    """Pure-JAX f32 reference matching the PyTorch module semantics."""
    B, S, H = x.shape
    head_dim = H // nums_head
    group = nums_head // nums_key_value_head

    q = x @ params["wq"] + params["bq"]
    k = x @ params["wk"] + params["bk"]
    v = x @ params["wv"] + params["bv"]

    q = q.reshape(B, S, nums_head, head_dim).transpose(0, 2, 1, 3)
    k = k.reshape(B, S, nums_key_value_head, head_dim).transpose(0, 2, 1, 3)
    v = v.reshape(B, S, nums_key_value_head, head_dim).transpose(0, 2, 1, 3)

    k = jnp.repeat(k, group, axis=1)
    v = jnp.repeat(v, group, axis=1)

    s = jnp.einsum("bhqd,bhkd->bhqk", q, k) / math.sqrt(head_dim)
    w = jax.nn.softmax(s, axis=-1)
    o = jnp.einsum("bhqk,bhkd->bhqd", w, v)
    o = o.transpose(0, 2, 1, 3).reshape(B, S, H)
    return o @ params["wo"] + params["bo"]


def init_params(key, hidden_dim, nums_key_value_head, nums_head):
    head_dim = hidden_dim // nums_head
    kv_dim = nums_key_value_head * head_dim
    ks = jax.random.split(key, 8)
    scale = 1.0 / math.sqrt(hidden_dim)
    return {
        "wq": jax.random.normal(ks[0], (hidden_dim, hidden_dim), jnp.float32) * scale,
        "bq": jax.random.normal(ks[1], (hidden_dim,), jnp.float32) * scale,
        "wk": jax.random.normal(ks[2], (hidden_dim, kv_dim), jnp.float32) * scale,
        "bk": jax.random.normal(ks[3], (kv_dim,), jnp.float32) * scale,
        "wv": jax.random.normal(ks[4], (hidden_dim, kv_dim), jnp.float32) * scale,
        "bv": jax.random.normal(ks[5], (kv_dim,), jnp.float32) * scale,
        "wo": jax.random.normal(ks[6], (hidden_dim, hidden_dim), jnp.float32) * scale,
        "bo": jax.random.normal(ks[7], (hidden_dim,), jnp.float32) * scale,
    }


if __name__ == "__main__":
    batch, seq, hidden = 2, 8, 32
    nums_head, nums_key_value_head = 4, 2

    key = jax.random.PRNGKey(0)
    kx, kp = jax.random.split(key)
    x = jax.random.normal(kx, (batch, seq, hidden), jnp.float32)
    params = init_params(kp, hidden, nums_key_value_head, nums_head)

    out = gqa_forward(x, params, nums_head, nums_key_value_head)
    out = jax.block_until_ready(out)

    ref = gqa_reference(x, params, nums_head, nums_key_value_head)
    assert out.shape == (batch, seq, hidden)
    # bf16 matmul inputs + approx reciprocal vs f32 reference -> relaxed tolerance.
    assert jnp.allclose(out, ref, atol=5e-2, rtol=5e-2), "mismatch vs reference"

    print("KERNEL_OK")
</pallas_src>

<mosaic_0001>
module attributes {stable_mosaic.version = 11 : i64} {
  func.func @kernel(%arg0: i32, %arg1: i32, %arg2: i32, %arg3: memref<1x8x32xbf16, #tpu.memory_space<vmem>>, %arg4: memref<1x8x32xbf16, #tpu.memory_space<vmem>>, %arg5: memref<32x32xbf16, #tpu.memory_space<vmem>>, %arg6: memref<1x32xf32, #tpu.memory_space<vmem>>, %arg7: memref<32x16xbf16, #tpu.memory_space<vmem>>, %arg8: memref<1x16xf32, #tpu.memory_space<vmem>>, %arg9: memref<32x16xbf16, #tpu.memory_space<vmem>>, %arg10: memref<1x16xf32, #tpu.memory_space<vmem>>, %arg11: memref<32x32xbf16, #tpu.memory_space<vmem>>, %arg12: memref<1x32xf32, #tpu.memory_space<vmem>>, %arg13: memref<1x8x32xf32, #tpu.memory_space<vmem>>, %arg14: memref<8x32xbf16, #tpu.memory_space<vmem>>, %arg15: memref<4x8x1xf32, #tpu.memory_space<vmem>>, %arg16: memref<4x8x1xf32, #tpu.memory_space<vmem>>, %arg17: memref<4x8x8xf32, #tpu.memory_space<vmem>>) attributes {dimension_semantics = [#tpu.dimension_semantics<parallel>, #tpu.dimension_semantics<parallel>, #tpu.dimension_semantics<arbitrary>], iteration_bounds = array<i64: 2, 1, 1>, scalar_prefetch = 0 : i64, scratch_operands = 4 : i64, tpu.core_type = #tpu.core_type<tc>, window_params = [{transform_indices = @transform_0, window_bounds = array<i64: 1, 8, 32>}, {transform_indices = @transform_1, window_bounds = array<i64: 1, 8, 32>}, {pipeline_mode = #tpu.pipeline_mode<synchronous>, transform_indices = @transform_2, window_bounds = array<i64: 32, 32>}, {pipeline_mode = #tpu.pipeline_mode<synchronous>, transform_indices = @transform_3, window_bounds = array<i64: 1, 32>}, {pipeline_mode = #tpu.pipeline_mode<synchronous>, transform_indices = @transform_4, window_bounds = array<i64: 32, 16>}, {pipeline_mode = #tpu.pipeline_mode<synchronous>, transform_indices = @transform_5, window_bounds = array<i64: 1, 16>}, {pipeline_mode = #tpu.pipeline_mode<synchronous>, transform_indices = @transform_6, window_bounds = array<i64: 32, 16>}, {pipeline_mode = #tpu.pipeline_mode<synchronous>, transform_indices = @transform_7, window_bounds = array<i64: 1, 16>}, {pipeline_mode = #tpu.pipeline_mode<synchronous>, transform_indices = @transform_8, window_bounds = array<i64: 32, 32>}, {pipeline_mode = #tpu.pipeline_mode<synchronous>, transform_indices = @transform_9, window_bounds = array<i64: 1, 32>}, {transform_indices = @transform_10, window_bounds = array<i64: 1, 8, 32>}]} {
    %c0_i32 = arith.constant 0 : i32
    %0 = arith.cmpi eq, %arg2, %c0_i32 : i32
    %1 = arith.extui %0 : i1 to i32
    %c0_i32_0 = arith.constant 0 : i32
    %2 = arith.cmpi ne, %1, %c0_i32_0 : i32
    scf.if %2 {
      %c0_104 = arith.constant 0 : index
      %c0_105 = arith.constant 0 : index
      %c0_106 = arith.constant 0 : index
      %164 = vector.load %arg3[%c0_104, %c0_105, %c0_106] : memref<1x8x32xbf16, #tpu.memory_space<vmem>>, vector<1x8x32xbf16>
      %165 = vector.shape_cast %164 : vector<1x8x32xbf16> to vector<8x32xbf16>
      %c0_107 = arith.constant 0 : index
      %c0_108 = arith.constant 0 : index
      %166 = vector.load %arg5[%c0_107, %c0_108] : memref<32x32xbf16, #tpu.memory_space<vmem>>, vector<32x32xbf16>
      %cst_109 = arith.constant dense<0.000000e+00> : vector<8x32xf32>
      %167 = tpu.matmul %165, %166, %cst_109 {dimension_numbers = #tpu.dot_dimension_numbers<[1], [0], [0], [1], [0, 0, 1, 1], [], []>} : vector<8x32xbf16>, vector<32x32xbf16>, vector<8x32xf32> -> vector<8x32xf32>
      %c0_110 = arith.constant 0 : index
      %c0_111 = arith.constant 0 : index
      %168 = vector.load %arg6[%c0_110, %c0_111] : memref<1x32xf32, #tpu.memory_space<vmem>>, vector<1x32xf32>
      %169 = vector.broadcast %168 : vector<1x32xf32> to vector<8x32xf32>
      %170 = arith.addf %167, %169 : vector<8x32xf32>
      %cst_112 = arith.constant 0.353553385 : f32
      %171 = vector.broadcast %cst_112 : f32 to vector<8x32xf32>
      %172 = arith.mulf %170, %171 : vector<8x32xf32>
      %173 = arith.truncf %172 : vector<8x32xf32> to vector<8x32xbf16>
      %c0_113 = arith.constant 0 : index
      %c0_114 = arith.constant 0 : index
      %174 = vector.load %arg14[%c0_113, %c0_114] : memref<8x32xbf16, #tpu.memory_space<vmem>>, vector<8x32xbf16>
      tpu.vector_store %arg14[%c0_113, %c0_114], %173 {strides = array<i32>} : memref<8x32xbf16, #tpu.memory_space<vmem>>, vector<8x32xbf16>,
      %cst_115 = arith.constant 0xFF800000 : f32
      %175 = vector.broadcast %cst_115 : f32 to vector<4x8x1xf32>
      %c0_116 = arith.constant 0 : index
      %c0_117 = arith.constant 0 : index
      %c0_118 = arith.constant 0 : index
      %176 = vector.load %arg15[%c0_116, %c0_117, %c0_118] : memref<4x8x1xf32, #tpu.memory_space<vmem>>, vector<4x8x1xf32>
      tpu.vector_store %arg15[%c0_116, %c0_117, %c0_118], %175 {strides = array<i32>} : memref<4x8x1xf32, #tpu.memory_space<vmem>>, vector<4x8x1xf32>,
      %cst_119 = arith.constant 0.000000e+00 : f32
      %177 = vector.broadcast %cst_119 : f32 to vector<4x8x1xf32>
      %c0_120 = arith.constant 0 : index
      %c0_121 = arith.constant 0 : index
      %c0_122 = arith.constant 0 : index
      %178 = vector.load %arg16[%c0_120, %c0_121, %c0_122] : memref<4x8x1xf32, #tpu.memory_space<vmem>>, vector<4x8x1xf32>
      tpu.vector_store %arg16[%c0_120, %c0_121, %c0_122], %177 {strides = array<i32>} : memref<4x8x1xf32, #tpu.memory_space<vmem>>, vector<4x8x1xf32>,
      %cst_123 = arith.constant 0.000000e+00 : f32
      %179 = vector.broadcast %cst_123 : f32 to vector<4x8x8xf32>
      %c0_124 = arith.constant 0 : index
      %c0_125 = arith.constant 0 : index
      %c0_126 = arith.constant 0 : index
      %180 = vector.load %arg17[%c0_124, %c0_125, %c0_126] : memref<4x8x8xf32, #tpu.memory_space<vmem>>, vector<4x8x8xf32>
      tpu.vector_store %arg17[%c0_124, %c0_125, %c0_126], %179 {strides = array<i32>} : memref<4x8x8xf32, #tpu.memory_space<vmem>>, vector<4x8x8xf32>,
    } else {
    }
    %c0 = arith.constant 0 : index
    %c0_1 = arith.constant 0 : index
    %c0_2 = arith.constant 0 : index
    %3 = vector.load %arg4[%c0, %c0_1, %c0_2] : memref<1x8x32xbf16, #tpu.memory_space<vmem>>, vector<1x8x32xbf16>
    %4 = vector.shape_cast %3 : vector<1x8x32xbf16> to vector<8x32xbf16>
    %c0_3 = arith.constant 0 : index
    %c0_4 = arith.constant 0 : index
    %5 = vector.load %arg7[%c0_3, %c0_4] : memref<32x16xbf16, #tpu.memory_space<vmem>>, vector<32x16xbf16>
    %cst = arith.constant dense<0.000000e+00> : vector<8x16xf32>
    %6 = tpu.matmul %4, %5, %cst {dimension_numbers = #tpu.dot_dimension_numbers<[1], [0], [0], [1], [0, 0, 1, 1], [], []>} : vector<8x32xbf16>, vector<32x16xbf16>, vector<8x16xf32> -> vector<8x16xf32>
    %c0_5 = arith.constant 0 : index
    %c0_6 = arith.constant 0 : index
    %7 = vector.load %arg8[%c0_5, %c0_6] : memref<1x16xf32, #tpu.memory_space<vmem>>, vector<1x16xf32>
    %8 = vector.broadcast %7 : vector<1x16xf32> to vector<8x16xf32>
    %9 = arith.addf %6, %8 : vector<8x16xf32>
    %10 = arith.truncf %9 : vector<8x16xf32> to vector<8x16xbf16>
    %c0_7 = arith.constant 0 : index
    %c0_8 = arith.constant 0 : index
    %11 = vector.load %arg9[%c0_7, %c0_8] : memref<32x16xbf16, #tpu.memory_space<vmem>>, vector<32x16xbf16>
    %cst_9 = arith.constant dense<0.000000e+00> : vector<8x16xf32>
    %12 = tpu.matmul %4, %11, %cst_9 {dimension_numbers = #tpu.dot_dimension_numbers<[1], [0], [0], [1], [0, 0, 1, 1], [], []>} : vector<8x32xbf16>, vector<32x16xbf16>, vector<8x16xf32> -> vector<8x16xf32>
    %c0_10 = arith.constant 0 : index
    %c0_11 = arith.constant 0 : index
    %13 = vector.load %arg10[%c0_10, %c0_11] : memref<1x16xf32, #tpu.memory_space<vmem>>, vector<1x16xf32>
    %14 = vector.broadcast %13 : vector<1x16xf32> to vector<8x16xf32>
    %15 = arith.addf %12, %14 : vector<8x16xf32>
    %16 = arith.truncf %15 : vector<8x16xf32> to vector<8x16xbf16>
    %c0_12 = arith.constant 0 : index
    %c0_13 = arith.constant 0 : index
    %17 = vector.load %arg14[%c0_12, %c0_13] : memref<8x32xbf16, #tpu.memory_space<vmem>>, vector<8x8xbf16>
    %18 = vector.extract_strided_slice %10 {offsets = [0, 0], sizes = [8, 8], strides = [1, 1]} : vector<8x16xbf16> to vector<8x8xbf16>
    %19 = vector.extract_strided_slice %16 {offsets = [0, 0], sizes = [8, 8], strides = [1, 1]} : vector<8x16xbf16> to vector<8x8xbf16>
    %cst_14 = arith.constant dense<0.000000e+00> : vector<8x8xf32>
    %20 = tpu.matmul %17, %18, %cst_14 {dimension_numbers = #tpu.dot_dimension_numbers<[1], [1], [0], [0], [0, 0, 1, 0], [], []>} : vector<8x8xbf16>, vector<8x8xbf16>, vector<8x8xf32> -> vector<8x8xf32>
    %c0_15 = arith.constant 0 : index
    %c0_16 = arith.constant 0 : index
    %c0_17 = arith.constant 0 : index
    %21 = vector.load %arg15[%c0_15, %c0_16, %c0_17] : memref<4x8x1xf32, #tpu.memory_space<vmem>>, vector<1x8x1xf32>
    %22 = vector.shape_cast %21 : vector<1x8x1xf32> to vector<8x1xf32>
    %cst_18 = arith.constant dense<0xFF800000> : vector<8xf32>
    %23 = vector.multi_reduction <maximumf>, %20, %cst_18 [1] : vector<8x8xf32> to vector<8xf32>
    %24 = vector.shape_cast %23 : vector<8xf32> to vector<8x1xf32>
    %25 = arith.maximumf %22, %24 : vector<8x1xf32>
    %26 = arith.subf %22, %25 : vector<8x1xf32>
    %27 = math.exp %26 : vector<8x1xf32>
    %28 = vector.broadcast %25 : vector<8x1xf32> to vector<8x8xf32>
    %29 = arith.subf %20, %28 : vector<8x8xf32>
    %30 = math.exp %29 : vector<8x8xf32>
    %c0_19 = arith.constant 0 : index
    %c0_20 = arith.constant 0 : index
    %c0_21 = arith.constant 0 : index
    %31 = vector.load %arg16[%c0_19, %c0_20, %c0_21] : memref<4x8x1xf32, #tpu.memory_space<vmem>>, vector<1x8x1xf32>
    %32 = vector.shape_cast %31 : vector<1x8x1xf32> to vector<8x1xf32>
    %33 = arith.mulf %27, %32 : vector<8x1xf32>
    %cst_22 = arith.constant dense<0.000000e+00> : vector<8xf32>
    %34 = vector.multi_reduction <add>, %30, %cst_22 [1] : vector<8x8xf32> to vector<8xf32>
    %35 = vector.shape_cast %34 : vector<8xf32> to vector<8x1xf32>
    %36 = arith.addf %33, %35 : vector<8x1xf32>
    %c0_23 = arith.constant 0 : index
    %c0_24 = arith.constant 0 : index
    %c0_25 = arith.constant 0 : index
    %37 = vector.load %arg16[%c0_23, %c0_24, %c0_25] : memref<4x8x1xf32, #tpu.memory_space<vmem>>, vector<1x8x1xf32>
    %38 = vector.shape_cast %37 : vector<1x8x1xf32> to vector<8x1xf32>
    %39 = vector.shape_cast %36 : vector<8x1xf32> to vector<1x8x1xf32>
    tpu.vector_store %arg16[%c0_23, %c0_24, %c0_25], %39 {strides = array<i32>} : memref<4x8x1xf32, #tpu.memory_space<vmem>>, vector<1x8x1xf32>,
    %c0_26 = arith.constant 0 : index
    %c0_27 = arith.constant 0 : index
    %c0_28 = arith.constant 0 : index
    %40 = vector.load %arg17[%c0_26, %c0_27, %c0_28] : memref<4x8x8xf32, #tpu.memory_space<vmem>>, vector<1x8x8xf32>
    %41 = vector.shape_cast %40 : vector<1x8x8xf32> to vector<8x8xf32>
    %42 = vector.broadcast %27 : vector<8x1xf32> to vector<8x8xf32>
    %43 = arith.mulf %42, %41 : vector<8x8xf32>
    %44 = arith.truncf %30 : vector<8x8xf32> to vector<8x8xbf16>
    %cst_29 = arith.constant dense<0.000000e+00> : vector<8x8xf32>
    %45 = tpu.matmul %44, %19, %cst_29 {dimension_numbers = #tpu.dot_dimension_numbers<[1], [0], [0], [1], [0, 0, 1, 1], [], []>} : vector<8x8xbf16>, vector<8x8xbf16>, vector<8x8xf32> -> vector<8x8xf32>
    %46 = arith.addf %43, %45 : vector<8x8xf32>
    %c0_30 = arith.constant 0 : index
    %c0_31 = arith.constant 0 : index
    %c0_32 = arith.constant 0 : index
    %47 = vector.load %arg17[%c0_30, %c0_31, %c0_32] : memref<4x8x8xf32, #tpu.memory_space<vmem>>, vector<1x8x8xf32>
    %48 = vector.shape_cast %47 : vector<1x8x8xf32> to vector<8x8xf32>
    %49 = vector.shape_cast %46 : vector<8x8xf32> to vector<1x8x8xf32>
    tpu.vector_store %arg17[%c0_30, %c0_31, %c0_32], %49 {strides = array<i32>} : memref<4x8x8xf32, #tpu.memory_space<vmem>>, vector<1x8x8xf32>,
    %c0_33 = arith.constant 0 : index
    %c0_34 = arith.constant 0 : index
    %c0_35 = arith.constant 0 : index
    %50 = vector.load %arg15[%c0_33, %c0_34, %c0_35] : memref<4x8x1xf32, #tpu.memory_space<vmem>>, vector<1x8x1xf32>
    %51 = vector.shape_cast %50 : vector<1x8x1xf32> to vector<8x1xf32>
    %52 = vector.shape_cast %25 : vector<8x1xf32> to vector<1x8x1xf32>
    tpu.vector_store %arg15[%c0_33, %c0_34, %c0_35], %52 {strides = array<i32>} : memref<4x8x1xf32, #tpu.memory_space<vmem>>, vector<1x8x1xf32>,
    %c0_36 = arith.constant 0 : index
    %c8 = arith.constant 8 : index
    %53 = vector.load %arg14[%c0_36, %c8] : memref<8x32xbf16, #tpu.memory_space<vmem>>, vector<8x8xbf16>
    %54 = vector.extract_strided_slice %10 {offsets = [0, 0], sizes = [8, 8], strides = [1, 1]} : vector<8x16xbf16> to vector<8x8xbf16>
    %55 = vector.extract_strided_slice %16 {offsets = [0, 0], sizes = [8, 8], strides = [1, 1]} : vector<8x16xbf16> to vector<8x8xbf16>
    %cst_37 = arith.constant dense<0.000000e+00> : vector<8x8xf32>
    %56 = tpu.matmul %53, %54, %cst_37 {dimension_numbers = #tpu.dot_dimension_numbers<[1], [1], [0], [0], [0, 0, 1, 0], [], []>} : vector<8x8xbf16>, vector<8x8xbf16>, vector<8x8xf32> -> vector<8x8xf32>
    %c1 = arith.constant 1 : index
    %c0_38 = arith.constant 0 : index
    %c0_39 = arith.constant 0 : index
    %57 = vector.load %arg15[%c1, %c0_38, %c0_39] : memref<4x8x1xf32, #tpu.memory_space<vmem>>, vector<1x8x1xf32>
    %58 = vector.shape_cast %57 : vector<1x8x1xf32> to vector<8x1xf32>
    %cst_40 = arith.constant dense<0xFF800000> : vector<8xf32>
    %59 = vector.multi_reduction <maximumf>, %56, %cst_40 [1] : vector<8x8xf32> to vector<8xf32>
    %60 = vector.shape_cast %59 : vector<8xf32> to vector<8x1xf32>
    %61 = arith.maximumf %58, %60 : vector<8x1xf32>
    %62 = arith.subf %58, %61 : vector<8x1xf32>
    %63 = math.exp %62 : vector<8x1xf32>
    %64 = vector.broadcast %61 : vector<8x1xf32> to vector<8x8xf32>
    %65 = arith.subf %56, %64 : vector<8x8xf32>
    %66 = math.exp %65 : vector<8x8xf32>
    %c1_41 = arith.constant 1 : index
    %c0_42 = arith.constant 0 : index
    %c0_43 = arith.constant 0 : index
    %67 = vector.load %arg16[%c1_41, %c0_42, %c0_43] : memref<4x8x1xf32, #tpu.memory_space<vmem>>, vector<1x8x1xf32>
    %68 = vector.shape_cast %67 : vector<1x8x1xf32> to vector<8x1xf32>
    %69 = arith.mulf %63, %68 : vector<8x1xf32>
    %cst_44 = arith.constant dense<0.000000e+00> : vector<8xf32>
    %70 = vector.multi_reduction <add>, %66, %cst_44 [1] : vector<8x8xf32> to vector<8xf32>
    %71 = vector.shape_cast %70 : vector<8xf32> to vector<8x1xf32>
    %72 = arith.addf %69, %71 : vector<8x1xf32>
    %c1_45 = arith.constant 1 : index
    %c0_46 = arith.constant 0 : index
    %c0_47 = arith.constant 0 : index
    %73 = vector.load %arg16[%c1_45, %c0_46, %c0_47] : memref<4x8x1xf32, #tpu.memory_space<vmem>>, vector<1x8x1xf32>
    %74 = vector.shape_cast %73 : vector<1x8x1xf32> to vector<8x1xf32>
    %75 = vector.shape_cast %72 : vector<8x1xf32> to vector<1x8x1xf32>
    tpu.vector_store %arg16[%c1_45, %c0_46, %c0_47], %75 {strides = array<i32>} : memref<4x8x1xf32, #tpu.memory_space<vmem>>, vector<1x8x1xf32>,
    %c1_48 = arith.constant 1 : index
    %c0_49 = arith.constant 0 : index
    %c0_50 = arith.constant 0 : index
    %76 = vector.load %arg17[%c1_48, %c0_49, %c0_50] : memref<4x8x8xf32, #tpu.memory_space<vmem>>, vector<1x8x8xf32>
    %77 = vector.shape_cast %76 : vector<1x8x8xf32> to vector<8x8xf32>
    %78 = vector.broadcast %63 : vector<8x1xf32> to vector<8x8xf32>
    %79 = arith.mulf %78, %77 : vector<8x8xf32>
    %80 = arith.truncf %66 : vector<8x8xf32> to vector<8x8xbf16>
    %cst_51 = arith.constant dense<0.000000e+00> : vector<8x8xf32>
    %81 = tpu.matmul %80, %55, %cst_51 {dimension_numbers = #tpu.dot_dimension_numbers<[1], [0], [0], [1], [0, 0, 1, 1], [], []>} : vector<8x8xbf16>, vector<8x8xbf16>, vector<8x8xf32> -> vector<8x8xf32>
    %82 = arith.addf %79, %81 : vector<8x8xf32>
    %c1_52 = arith.constant 1 : index
    %c0_53 = arith.constant 0 : index
    %c0_54 = arith.constant 0 : index
    %83 = vector.load %arg17[%c1_52, %c0_53, %c0_54] : memref<4x8x8xf32, #tpu.memory_space<vmem>>, vector<1x8x8xf32>
    %84 = vector.shape_cast %83 : vector<1x8x8xf32> to vector<8x8xf32>
    %85 = vector.shape_cast %82 : vector<8x8xf32> to vector<1x8x8xf32>
    tpu.vector_store %arg17[%c1_52, %c0_53, %c0_54], %85 {strides = array<i32>} : memref<4x8x8xf32, #tpu.memory_space<vmem>>, vector<1x8x8xf32>,
    %c1_55 = arith.constant 1 : index
    %c0_56 = arith.constant 0 : index
    %c0_57 = arith.constant 0 : index
    %86 = vector.load %arg15[%c1_55, %c0_56, %c0_57] : memref<4x8x1xf32, #tpu.memory_space<vmem>>, vector<1x8x1xf32>
    %87 = vector.shape_cast %86 : vector<1x8x1xf32> to vector<8x1xf32>
    %88 = vector.shape_cast %61 : vector<8x1xf32> to vector<1x8x1xf32>
    tpu.vector_store %arg15[%c1_55, %c0_56, %c0_57], %88 {strides = array<i32>} : memref<4x8x1xf32, #tpu.memory_space<vmem>>, vector<1x8x1xf32>,
    %c0_58 = arith.constant 0 : index
    %c16 = arith.constant 16 : index
    %89 = vector.load %arg14[%c0_58, %c16] : memref<8x32xbf16, #tpu.memory_space<vmem>>, vector<8x8xbf16>
    %90 = vector.extract_strided_slice %10 {offsets = [0, 8], sizes = [8, 8], strides = [1, 1]} : vector<8x16xbf16> to vector<8x8xbf16>
    %91 = vector.extract_strided_slice %16 {offsets = [0, 8], sizes = [8, 8], strides = [1, 1]} : vector<8x16xbf16> to vector<8x8xbf16>
    %cst_59 = arith.constant dense<0.000000e+00> : vector<8x8xf32>
    %92 = tpu.matmul %89, %90, %cst_59 {dimension_numbers = #tpu.dot_dimension_numbers<[1], [1], [0], [0], [0, 0, 1, 0], [], []>} : vector<8x8xbf16>, vector<8x8xbf16>, vector<8x8xf32> -> vector<8x8xf32>
    %c2 = arith.constant 2 : index
    %c0_60 = arith.constant 0 : index
    %c0_61 = arith.constant 0 : index
    %93 = vector.load %arg15[%c2, %c0_60, %c0_61] : memref<4x8x1xf32, #tpu.memory_space<vmem>>, vector<1x8x1xf32>
    %94 = vector.shape_cast %93 : vector<1x8x1xf32> to vector<8x1xf32>
    %cst_62 = arith.constant dense<0xFF800000> : vector<8xf32>
    %95 = vector.multi_reduction <maximumf>, %92, %cst_62 [1] : vector<8x8xf32> to vector<8xf32>
    %96 = vector.shape_cast %95 : vector<8xf32> to vector<8x1xf32>
    %97 = arith.maximumf %94, %96 : vector<8x1xf32>
    %98 = arith.subf %94, %97 : vector<8x1xf32>
    %99 = math.exp %98 : vector<8x1xf32>
    %100 = vector.broadcast %97 : vector<8x1xf32> to vector<8x8xf32>
    %101 = arith.subf %92, %100 : vector<8x8xf32>
    %102 = math.exp %101 : vector<8x8xf32>
    %c2_63 = arith.constant 2 : index
    %c0_64 = arith.constant 0 : index
    %c0_65 = arith.constant 0 : index
    %103 = vector.load %arg16[%c2_63, %c0_64, %c0_65] : memref<4x8x1xf32, #tpu.memory_space<vmem>>, vector<1x8x1xf32>
    %104 = vector.shape_cast %103 : vector<1x8x1xf32> to vector<8x1xf32>
    %105 = arith.mulf %99, %104 : vector<8x1xf32>
    %cst_66 = arith.constant dense<0.000000e+00> : vector<8xf32>
    %106 = vector.multi_reduction <add>, %102, %cst_66 [1] : vector<8x8xf32> to vector<8xf32>
    %107 = vector.shape_cast %106 : vector<8xf32> to vector<8x1xf32>
    %108 = arith.addf %105, %107 : vector<8x1xf32>
    %c2_67 = arith.constant 2 : index
    %c0_68 = arith.constant 0 : index
    %c0_69 = arith.constant 0 : index
    %109 = vector.load %arg16[%c2_67, %c0_68, %c0_69] : memref<4x8x1xf32, #tpu.memory_space<vmem>>, vector<1x8x1xf32>
    %110 = vector.shape_cast %109 : vector<1x8x1xf32> to vector<8x1xf32>
    %111 = vector.shape_cast %108 : vector<8x1xf32> to vector<1x8x1xf32>
    tpu.vector_store %arg16[%c2_67, %c0_68, %c0_69], %111 {strides = array<i32>} : memref<4x8x1xf32, #tpu.memory_space<vmem>>, vector<1x8x1xf32>,
    %c2_70 = arith.constant 2 : index
    %c0_71 = arith.constant 0 : index
    %c0_72 = arith.constant 0 : index
    %112 = vector.load %arg17[%c2_70, %c0_71, %c0_72] : memref<4x8x8xf32, #tpu.memory_space<vmem>>, vector<1x8x8xf32>
    %113 = vector.shape_cast %112 : vector<1x8x8xf32> to vector<8x8xf32>
    %114 = vector.broadcast %99 : vector<8x1xf32> to vector<8x8xf32>
    %115 = arith.mulf %114, %113 : vector<8x8xf32>
    %116 = arith.truncf %102 : vector<8x8xf32> to vector<8x8xbf16>
    %cst_73 = arith.constant dense<0.000000e+00> : vector<8x8xf32>
    %117 = tpu.matmul %116, %91, %cst_73 {dimension_numbers = #tpu.dot_dimension_numbers<[1], [0], [0], [1], [0, 0, 1, 1], [], []>} : vector<8x8xbf16>, vector<8x8xbf16>, vector<8x8xf32> -> vector<8x8xf32>
    %118 = arith.addf %115, %117 : vector<8x8xf32>
    %c2_74 = arith.constant 2 : index
    %c0_75 = arith.constant 0 : index
    %c0_76 = arith.constant 0 : index
    %119 = vector.load %arg17[%c2_74, %c0_75, %c0_76] : memref<4x8x8xf32, #tpu.memory_space<vmem>>, vector<1x8x8xf32>
    %120 = vector.shape_cast %119 : vector<1x8x8xf32> to vector<8x8xf32>
    %121 = vector.shape_cast %118 : vector<8x8xf32> to vector<1x8x8xf32>
    tpu.vector_store %arg17[%c2_74, %c0_75, %c0_76], %121 {strides = array<i32>} : memref<4x8x8xf32, #tpu.memory_space<vmem>>, vector<1x8x8xf32>,
    %c2_77 = arith.constant 2 : index
    %c0_78 = arith.constant 0 : index
    %c0_79 = arith.constant 0 : index
    %122 = vector.load %arg15[%c2_77, %c0_78, %c0_79] : memref<4x8x1xf32, #tpu.memory_space<vmem>>, vector<1x8x1xf32>
    %123 = vector.shape_cast %122 : vector<1x8x1xf32> to vector<8x1xf32>
    %124 = vector.shape_cast %97 : vector<8x1xf32> to vector<1x8x1xf32>
    tpu.vector_store %arg15[%c2_77, %c0_78, %c0_79], %124 {strides = array<i32>} : memref<4x8x1xf32, #tpu.memory_space<vmem>>, vector<1x8x1xf32>,
    %c0_80 = arith.constant 0 : index
    %c24 = arith.constant 24 : index
    %125 = vector.load %arg14[%c0_80, %c24] : memref<8x32xbf16, #tpu.memory_space<vmem>>, vector<8x8xbf16>
    %126 = vector.extract_strided_slice %10 {offsets = [0, 8], sizes = [8, 8], strides = [1, 1]} : vector<8x16xbf16> to vector<8x8xbf16>
    %127 = vector.extract_strided_slice %16 {offsets = [0, 8], sizes = [8, 8], strides = [1, 1]} : vector<8x16xbf16> to vector<8x8xbf16>
    %cst_81 = arith.constant dense<0.000000e+00> : vector<8x8xf32>
    %128 = tpu.matmul %125, %126, %cst_81 {dimension_numbers = #tpu.dot_dimension_numbers<[1], [1], [0], [0], [0, 0, 1, 0], [], []>} : vector<8x8xbf16>, vector<8x8xbf16>, vector<8x8xf32> -> vector<8x8xf32>
    %c3 = arith.constant 3 : index
    %c0_82 = arith.constant 0 : index
    %c0_83 = arith.constant 0 : index
    %129 = vector.load %arg15[%c3, %c0_82, %c0_83] : memref<4x8x1xf32, #tpu.memory_space<vmem>>, vector<1x8x1xf32>
    %130 = vector.shape_cast %129 : vector<1x8x1xf32> to vector<8x1xf32>
    %cst_84 = arith.constant dense<0xFF800000> : vector<8xf32>
    %131 = vector.multi_reduction <maximumf>, %128, %cst_84 [1] : vector<8x8xf32> to vector<8xf32>
    %132 = vector.shape_cast %131 : vector<8xf32> to vector<8x1xf32>
    %133 = arith.maximumf %130, %132 : vector<8x1xf32>
    %134 = arith.subf %130, %133 : vector<8x1xf32>
    %135 = math.exp %134 : vector<8x1xf32>
    %136 = vector.broadcast %133 : vector<8x1xf32> to vector<8x8xf32>
    %137 = arith.subf %128, %136 : vector<8x8xf32>
    %138 = math.exp %137 : vector<8x8xf32>
    %c3_85 = arith.constant 3 : index
    %c0_86 = arith.constant 0 : index
    %c0_87 = arith.constant 0 : index
    %139 = vector.load %arg16[%c3_85, %c0_86, %c0_87] : memref<4x8x1xf32, #tpu.memory_space<vmem>>, vector<1x8x1xf32>
    %140 = vector.shape_cast %139 : vector<1x8x1xf32> to vector<8x1xf32>
    %141 = arith.mulf %135, %140 : vector<8x1xf32>
    %cst_88 = arith.constant dense<0.000000e+00> : vector<8xf32>
    %142 = vector.multi_reduction <add>, %138, %cst_88 [1] : vector<8x8xf32> to vector<8xf32>
    %143 = vector.shape_cast %142 : vector<8xf32> to vector<8x1xf32>
    %144 = arith.addf %141, %143 : vector<8x1xf32>
    %c3_89 = arith.constant 3 : index
    %c0_90 = arith.constant 0 : index
    %c0_91 = arith.constant 0 : index
    %145 = vector.load %arg16[%c3_89, %c0_90, %c0_91] : memref<4x8x1xf32, #tpu.memory_space<vmem>>, vector<1x8x1xf32>
    %146 = vector.shape_cast %145 : vector<1x8x1xf32> to vector<8x1xf32>
    %147 = vector.shape_cast %144 : vector<8x1xf32> to vector<1x8x1xf32>
    tpu.vector_store %arg16[%c3_89, %c0_90, %c0_91], %147 {strides = array<i32>} : memref<4x8x1xf32, #tpu.memory_space<vmem>>, vector<1x8x1xf32>,
    %c3_92 = arith.constant 3 : index
    %c0_93 = arith.constant 0 : index
    %c0_94 = arith.constant 0 : index
    %148 = vector.load %arg17[%c3_92, %c0_93, %c0_94] : memref<4x8x8xf32, #tpu.memory_space<vmem>>, vector<1x8x8xf32>
    %149 = vector.shape_cast %148 : vector<1x8x8xf32> to vector<8x8xf32>
    %150 = vector.broadcast %135 : vector<8x1xf32> to vector<8x8xf32>
    %151 = arith.mulf %150, %149 : vector<8x8xf32>
    %152 = arith.truncf %138 : vector<8x8xf32> to vector<8x8xbf16>
    %cst_95 = arith.constant dense<0.000000e+00> : vector<8x8xf32>
    %153 = tpu.matmul %152, %127, %cst_95 {dimension_numbers = #tpu.dot_dimension_numbers<[1], [0], [0], [1], [0, 0, 1, 1], [], []>} : vector<8x8xbf16>, vector<8x8xbf16>, vector<8x8xf32> -> vector<8x8xf32>
    %154 = arith.addf %151, %153 : vector<8x8xf32>
    %c3_96 = arith.constant 3 : index
    %c0_97 = arith.constant 0 : index
    %c0_98 = arith.constant 0 : index
    %155 = vector.load %arg17[%c3_96, %c0_97, %c0_98] : memref<4x8x8xf32, #tpu.memory_space<vmem>>, vector<1x8x8xf32>
    %156 = vector.shape_cast %155 : vector<1x8x8xf32> to vector<8x8xf32>
    %157 = vector.shape_cast %154 : vector<8x8xf32> to vector<1x8x8xf32>
    tpu.vector_store %arg17[%c3_96, %c0_97, %c0_98], %157 {strides = array<i32>} : memref<4x8x8xf32, #tpu.memory_space<vmem>>, vector<1x8x8xf32>,
    %c3_99 = arith.constant 3 : index
    %c0_100 = arith.constant 0 : index
    %c0_101 = arith.constant 0 : index
    %158 = vector.load %arg15[%c3_99, %c0_100, %c0_101] : memref<4x8x1xf32, #tpu.memory_space<vmem>>, vector<1x8x1xf32>
    %159 = vector.shape_cast %158 : vector<1x8x1xf32> to vector<8x1xf32>
    %160 = vector.shape_cast %133 : vector<8x1xf32> to vector<1x8x1xf32>
    tpu.vector_store %arg15[%c3_99, %c0_100, %c0_101], %160 {strides = array<i32>} : memref<4x8x1xf32, #tpu.memory_space<vmem>>, vector<1x8x1xf32>,
    %c0_i32_102 = arith.constant 0 : i32
    %161 = arith.cmpi eq, %arg2, %c0_i32_102 : i32
    %162 = arith.extui %161 : i1 to i32
    %c0_i32_103 = arith.constant 0 : i32
    %163 = arith.cmpi ne, %162, %c0_i32_103 : i32
    scf.if %163 {
      %cst_104 = arith.constant 0.000000e+00 : f32
      %164 = vector.broadcast %cst_104 : f32 to vector<8x32xf32>
      %c0_105 = arith.constant 0 : index
      %c0_106 = arith.constant 0 : index
      %165 = vector.load %arg12[%c0_105, %c0_106] : memref<1x32xf32, #tpu.memory_space<vmem>>, vector<1x32xf32>
      %166 = vector.broadcast %165 : vector<1x32xf32> to vector<8x32xf32>
      %167 = arith.addf %164, %166 : vector<8x32xf32>
      %c0_107 = arith.constant 0 : index
      %c0_108 = arith.constant 0 : index
      %c0_109 = arith.constant 0 : index
      %168 = vector.load %arg16[%c0_107, %c0_108, %c0_109] : memref<4x8x1xf32, #tpu.memory_space<vmem>>, vector<1x8x1xf32>
      %169 = vector.shape_cast %168 : vector<1x8x1xf32> to vector<8x1xf32>
      %170 = tpu.reciprocal %169 {approx = true} : vector<8x1xf32> -> vector<8x1xf32>
      %c0_110 = arith.constant 0 : index
      %c0_111 = arith.constant 0 : index
      %c0_112 = arith.constant 0 : index
      %171 = vector.load %arg17[%c0_110, %c0_111, %c0_112] : memref<4x8x8xf32, #tpu.memory_space<vmem>>, vector<1x8x8xf32>
      %172 = vector.shape_cast %171 : vector<1x8x8xf32> to vector<8x8xf32>
      %173 = vector.broadcast %170 : vector<8x1xf32> to vector<8x8xf32>
      %174 = arith.mulf %172, %173 : vector<8x8xf32>
      %175 = arith.truncf %174 : vector<8x8xf32> to vector<8x8xbf16>
      %c0_113 = arith.constant 0 : index
      %c0_114 = arith.constant 0 : index
      %176 = vector.load %arg11[%c0_113, %c0_114] : memref<32x32xbf16, #tpu.memory_space<vmem>>, vector<8x32xbf16>
      %cst_115 = arith.constant dense<0.000000e+00> : vector<8x32xf32>
      %177 = tpu.matmul %175, %176, %cst_115 {dimension_numbers = #tpu.dot_dimension_numbers<[1], [0], [0], [1], [0, 0, 1, 1], [], []>} : vector<8x8xbf16>, vector<8x32xbf16>, vector<8x32xf32> -> vector<8x32xf32>
      %178 = arith.addf %167, %177 : vector<8x32xf32>
      %c1_116 = arith.constant 1 : index
      %c0_117 = arith.constant 0 : index
      %c0_118 = arith.constant 0 : index
      %179 = vector.load %arg16[%c1_116, %c0_117, %c0_118] : memref<4x8x1xf32, #tpu.memory_space<vmem>>, vector<1x8x1xf32>
      %180 = vector.shape_cast %179 : vector<1x8x1xf32> to vector<8x1xf32>
      %181 = tpu.reciprocal %180 {approx = true} : vector<8x1xf32> -> vector<8x1xf32>
      %c1_119 = arith.constant 1 : index
      %c0_120 = arith.constant 0 : index
      %c0_121 = arith.constant 0 : index
      %182 = vector.load %arg17[%c1_119, %c0_120, %c0_121] : memref<4x8x8xf32, #tpu.memory_space<vmem>>, vector<1x8x8xf32>
      %183 = vector.shape_cast %182 : vector<1x8x8xf32> to vector<8x8xf32>
      %184 = vector.broadcast %181 : vector<8x1xf32> to vector<8x8xf32>
      %185 = arith.mulf %183, %184 : vector<8x8xf32>
      %186 = arith.truncf %185 : vector<8x8xf32> to vector<8x8xbf16>
      %c8_122 = arith.constant 8 : index
      %c0_123 = arith.constant 0 : index
      %187 = vector.load %arg11[%c8_122, %c0_123] : memref<32x32xbf16, #tpu.memory_space<vmem>>, vector<8x32xbf16>
      %cst_124 = arith.constant dense<0.000000e+00> : vector<8x32xf32>
      %188 = tpu.matmul %186, %187, %cst_124 {dimension_numbers = #tpu.dot_dimension_numbers<[1], [0], [0], [1], [0, 0, 1, 1], [], []>} : vector<8x8xbf16>, vector<8x32xbf16>, vector<8x32xf32> -> vector<8x32xf32>
      %189 = arith.addf %178, %188 : vector<8x32xf32>
      %c2_125 = arith.constant 2 : index
      %c0_126 = arith.constant 0 : index
      %c0_127 = arith.constant 0 : index
      %190 = vector.load %arg16[%c2_125, %c0_126, %c0_127] : memref<4x8x1xf32, #tpu.memory_space<vmem>>, vector<1x8x1xf32>
      %191 = vector.shape_cast %190 : vector<1x8x1xf32> to vector<8x1xf32>
      %192 = tpu.reciprocal %191 {approx = true} : vector<8x1xf32> -> vector<8x1xf32>
      %c2_128 = arith.constant 2 : index
      %c0_129 = arith.constant 0 : index
      %c0_130 = arith.constant 0 : index
      %193 = vector.load %arg17[%c2_128, %c0_129, %c0_130] : memref<4x8x8xf32, #tpu.memory_space<vmem>>, vector<1x8x8xf32>
      %194 = vector.shape_cast %193 : vector<1x8x8xf32> to vector<8x8xf32>
      %195 = vector.broadcast %192 : vector<8x1xf32> to vector<8x8xf32>
      %196 = arith.mulf %194, %195 : vector<8x8xf32>
      %197 = arith.truncf %196 : vector<8x8xf32> to vector<8x8xbf16>
      %c16_131 = arith.constant 16 : index
      %c0_132 = arith.constant 0 : index
      %198 = vector.load %arg11[%c16_131, %c0_132] : memref<32x32xbf16, #tpu.memory_space<vmem>>, vector<8x32xbf16>
      %cst_133 = arith.constant dense<0.000000e+00> : vector<8x32xf32>
      %199 = tpu.matmul %197, %198, %cst_133 {dimension_numbers = #tpu.dot_dimension_numbers<[1], [0], [0], [1], [0, 0, 1, 1], [], []>} : vector<8x8xbf16>, vector<8x32xbf16>, vector<8x32xf32> -> vector<8x32xf32>
      %200 = arith.addf %189, %199 : vector<8x32xf32>
      %c3_134 = arith.constant 3 : index
      %c0_135 = arith.constant 0 : index
      %c0_136 = arith.constant 0 : index
      %201 = vector.load %arg16[%c3_134, %c0_135, %c0_136] : memref<4x8x1xf32, #tpu.memory_space<vmem>>, vector<1x8x1xf32>
      %202 = vector.shape_cast %201 : vector<1x8x1xf32> to vector<8x1xf32>
      %203 = tpu.reciprocal %202 {approx = true} : vector<8x1xf32> -> vector<8x1xf32>
      %c3_137 = arith.constant 3 : index
      %c0_138 = arith.constant 0 : index
      %c0_139 = arith.constant 0 : index
      %204 = vector.load %arg17[%c3_137, %c0_138, %c0_139] : memref<4x8x8xf32, #tpu.memory_space<vmem>>, vector<1x8x8xf32>
      %205 = vector.shape_cast %204 : vector<1x8x8xf32> to vector<8x8xf32>
      %206 = vector.broadcast %203 : vector<8x1xf32> to vector<8x8xf32>
      %207 = arith.mulf %205, %206 : vector<8x8xf32>
      %208 = arith.truncf %207 : vector<8x8xf32> to vector<8x8xbf16>
      %c24_140 = arith.constant 24 : index
      %c0_141 = arith.constant 0 : index
      %209 = vector.load %arg11[%c24_140, %c0_141] : memref<32x32xbf16, #tpu.memory_space<vmem>>, vector<8x32xbf16>
      %cst_142 = arith.constant dense<0.000000e+00> : vector<8x32xf32>
      %210 = tpu.matmul %208, %209, %cst_142 {dimension_numbers = #tpu.dot_dimension_numbers<[1], [0], [0], [1], [0, 0, 1, 1], [], []>} : vector<8x8xbf16>, vector<8x32xbf16>, vector<8x32xf32> -> vector<8x32xf32>
      %211 = arith.addf %200, %210 : vector<8x32xf32>
      %c0_143 = arith.constant 0 : index
      %c0_144 = arith.constant 0 : index
      %c0_145 = arith.constant 0 : index
      %212 = vector.load %arg13[%c0_143, %c0_144, %c0_145] : memref<1x8x32xf32, #tpu.memory_space<vmem>>, vector<1x8x32xf32>
      %213 = vector.shape_cast %212 : vector<1x8x32xf32> to vector<8x32xf32>
      %214 = vector.shape_cast %211 : vector<8x32xf32> to vector<1x8x32xf32>
      tpu.vector_store %arg13[%c0_143, %c0_144, %c0_145], %214 {strides = array<i32>} : memref<1x8x32xf32, #tpu.memory_space<vmem>>, vector<1x8x32xf32>,
    } else {
    }
    return
  }
  func.func @transform_0(%arg0: i32, %arg1: i32, %arg2: i32) -> (i32, i32, i32) {
    %c0_i32 = arith.constant 0 : i32
    %c0_i32_0 = arith.constant 0 : i32
    return %arg0, %arg1, %c0_i32 : i32, i32, i32
  }
  func.func @transform_1(%arg0: i32, %arg1: i32, %arg2: i32) -> (i32, i32, i32) {
    %c0_i32 = arith.constant 0 : i32
    %c0_i32_0 = arith.constant 0 : i32
    return %arg0, %arg2, %c0_i32 : i32, i32, i32
  }
  func.func @transform_2(%arg0: i32, %arg1: i32, %arg2: i32) -> (i32, i32) {
    %c0_i32 = arith.constant 0 : i32
    %c0_i32_0 = arith.constant 0 : i32
    %c0_i32_1 = arith.constant 0 : i32
    return %c0_i32, %c0_i32_0 : i32, i32
  }
  func.func @transform_3(%arg0: i32, %arg1: i32, %arg2: i32) -> (i32, i32) {
    %c0_i32 = arith.constant 0 : i32
    %c0_i32_0 = arith.constant 0 : i32
    %c0_i32_1 = arith.constant 0 : i32
    return %c0_i32, %c0_i32_0 : i32, i32
  }
  func.func @transform_4(%arg0: i32, %arg1: i32, %arg2: i32) -> (i32, i32) {
    %c0_i32 = arith.constant 0 : i32
    %c0_i32_0 = arith.constant 0 : i32
    %c0_i32_1 = arith.constant 0 : i32
    return %c0_i32, %c0_i32_0 : i32, i32
  }
  func.func @transform_5(%arg0: i32, %arg1: i32, %arg2: i32) -> (i32, i32) {
    %c0_i32 = arith.constant 0 : i32
    %c0_i32_0 = arith.constant 0 : i32
    %c0_i32_1 = arith.constant 0 : i32
    return %c0_i32, %c0_i32_0 : i32, i32
  }
  func.func @transform_6(%arg0: i32, %arg1: i32, %arg2: i32) -> (i32, i32) {
    %c0_i32 = arith.constant 0 : i32
    %c0_i32_0 = arith.constant 0 : i32
    %c0_i32_1 = arith.constant 0 : i32
    return %c0_i32, %c0_i32_0 : i32, i32
  }
  func.func @transform_7(%arg0: i32, %arg1: i32, %arg2: i32) -> (i32, i32) {
    %c0_i32 = arith.constant 0 : i32
    %c0_i32_0 = arith.constant 0 : i32
    %c0_i32_1 = arith.constant 0 : i32
    return %c0_i32, %c0_i32_0 : i32, i32
  }
  func.func @transform_8(%arg0: i32, %arg1: i32, %arg2: i32) -> (i32, i32) {
    %c0_i32 = arith.constant 0 : i32
    %c0_i32_0 = arith.constant 0 : i32
    %c0_i32_1 = arith.constant 0 : i32
    return %c0_i32, %c0_i32_0 : i32, i32
  }
  func.func @transform_9(%arg0: i32, %arg1: i32, %arg2: i32) -> (i32, i32) {
    %c0_i32 = arith.constant 0 : i32
    %c0_i32_0 = arith.constant 0 : i32
    %c0_i32_1 = arith.constant 0 : i32
    return %c0_i32, %c0_i32_0 : i32, i32
  }
  func.func @transform_10(%arg0: i32, %arg1: i32, %arg2: i32) -> (i32, i32, i32) {
    %c0_i32 = arith.constant 0 : i32
    %c0_i32_0 = arith.constant 0 : i32
    return %arg0, %arg1, %c0_i32 : i32, i32, i32
  }
}

</mosaic_0001>

<bundles_post_ra>
// kernel: tpu_custom_call.1
= control target key start
LH: loop header
LB: loop body
LE: loop exit
PB: predicated region body
PF: predicated region fallthrough
CT: control target
= control target key end

     0   :  { %s1736_s0 = inlined_call_operand.vmem [shape: bf16[2,8,32], index: 0, kind: input, shape index: {}]   ;;  %s1737_s1 = inlined_call_operand.hbm [shape: bf16[2,8,32], index: 1, kind: input, shape index: {}]   ;;  %s1738_s2 = inlined_call_operand.vmem [shape: bf16[32,32], index: 2, kind: input, shape index: {}]   ;;  %s1739_s3 = inlined_call_operand.vmem [shape: f32[1,32], index: 3, kind: input, shape index: {}]   ;;  %s1740_s4 = inlined_call_operand.vmem [shape: bf16[32,16], index: 4, kind: input, shape index: {}]   ;;  %s1741_s5 = inlined_call_operand.vmem [shape: f32[1,16], index: 5, kind: input, shape index: {}]   ;;  %s1742_s6 = inlined_call_operand.vmem [shape: bf16[32,16], index: 6, kind: input, shape index: {}]   ;;  %s1743_s7 = inlined_call_operand.vmem [shape: f32[1,16], index: 7, kind: input, shape index: {}]   ;;  %s1744_s8 = inlined_call_operand.vmem [shape: bf16[32,32], index: 8, kind: input, shape index: {}]   ;;  %s1745_s9 = inlined_call_operand.vmem [shape: f32[1,32], index: 9, kind: input, shape index: {}]   ;;  %s1746_s10 = inlined_call_operand.hbm [shape: f32[2,8,32], index: 10, kind: output, shape index: {}]  }
   0x1   :  { %1751 = sst [smem:[#allocation15_spill]] %s1737_s1 }
   0x2   :  { %15 = vsyncpa [#allocation7], 0 }
   0x3   :  { %17 = vsyncpa [#allocation7 + $0x1], 0 }
   0x4   :  { %18 = vsyncpa [#allocation8], 0 }
   0x5   :  { %20 = vsyncpa [#allocation8 + $0x1], 0  ;;  %s1461_s13 = smov 0   ;;  %s1463_s14 = smov 0  }
   0x6   :  { %s1465_s15 = smov 0   ;;  %s1467_s16 = smov 0  }
   0x7   :  { %s1469_s17 = smov 0   ;;  %s1471_s18 = smov 0  }
   0x8 LB: > { %1752 = sst [smem:[#allocation12_spill]] %s1378_s13  ;;  %s1128_s19 = sadd.s32 4294967295, %s1398_s18   ;;  %s1398_s18 = sphi %s1471_s18, %s26_s18   ;;  %s1394_s17 = sphi %s1469_s17, %s1767_s17   ;;  %s1390_s16 = sphi %s1467_s16, %s1766_s16   ;;  %s1386_s15 = sphi %s1465_s15, %s1765_s15   ;;  %s1382_s14 = sphi %s1463_s14, %s1764_s14   ;;  %s1378_s13 = sphi %s1461_s13, %s1763_s13  }
   0x9   : > { %s1129_s20 = sadd.s32 4294967294, %s1398_s18   ;;  %s45_s21 = sadd.s32 1, %s1394_s17 }
   0xa   : > { %s82_s22 = sadd.s32 1, %s1386_s15  ;;  %p47_p0 = scmp.ge.s32.totalorder %s45_s21, 2 }
   0xb   : > { %p89_p1 = scmp.ne.s32.totalorder %s1386_s15, %s1382_s14  ;;  %p90_p2 = scmp.eq.s32.totalorder %s1398_s18, 0 }
   0xc   : > { %p95_p3 = scmp.ne.s32.totalorder %s1382_s14, %s1378_s13  ;;  %s1769_s21 = smov (%p47_p0, %s45_s21), 0 }
   0xd   : > { %1753 = sst [smem:[#allocation13_spill]] %s1769_s21  ;;  %p1502_p4 = por %p90_p2, %p89_p1 }
   0xe   : > { %p96_p5 = scmp.eq.s32.totalorder %s1128_s19, 0  ;;  %s77_s24 = ssub.s32 %s1394_s17, %s1769_s21 }
   0xf   : > { %p289_p6 = scmp.eq.s32.totalorder %s1128_s19, 1  ;;  %p80_p7 = scmp.eq.s32.totalorder %s77_s24, 0 }
  0x10   : > { %p1508_p8 = por %p96_p5, %p95_p3  ;;  %p295_p10 = scmp.eq.s32.totalorder %s1129_s20, 1 }
  0x11   : > { %p1512_p9 = por %p289_p6, %p89_p1  ;;  %p1131_p12 = scmp.ge.s32.totalorder %s1398_s18, 2 }
  0x12   : > { %s1517_s27 = scalar_select %p80_p7, %s1386_s15, %s82_s22  }
  0x13   : > { %s1756_s26 = scalar_select %p1512_p9, 1, 0 }
  0x14   : > { %p1519_p11 = por %p295_p10, %p95_p3  ;;  %p1199_p13 = scmp.lt.s32.totalorder %s1398_s18, 2 }
  0x15   : > { %1757 = sst [smem:[#allocation14_spill]] %s1756_s26  ;;  %s349_s29 = sand.u32 1, %s1386_s15  }
  0x16   : > { %s1132_s30 = sshll.u32 %s349_s29, 2  ;;  %s1133_s11 = sshll.u32 %s1394_s17, 2 }
  0x17   : > { %s1759_s1 = sld [smem:[#allocation15_spill]]  ;;  %s353_s21 = scalar_lea.vmem [#allocation6], %s1132_s30 }
  0x18   : > { %s362_s13 = sshll.u32 %s353_s21, 4  ;;  %p1192_p0 = pnand %p1199_p13, %p1502_p4  ;;  %s363_s13 = int_to_ptr.vmem [resolvable:$true] %s362_s13 }
  0x19   : > { %p1134_p1 = scmp.ge.s32.totalorder %s1398_s18, 1  ;;  %p367_p2 = scmp.lt.s32.totalorder %s1398_s18, 3 }
  0x1a   : > { %s350_s20 = scalar_lea.sflag [#allocation7], %s349_s29 }
  0x1b   : > { %p368_p3 = pnand %p1134_p1, %p367_p2 }
  0x1c   : > { %s1535_s22 = sand.u32 (!%p368_p3), 1, %s1382_s14  }
  0x1d   : > { %s358_s24 = scalar_lea.hbm %s1759_s1, %s1133_s11  ;;  %371 = sbr.rel (%p368_p3) target bundleno = 1084 (0x43c), region = 60 }
  0x1e   : > { %s360_s26 = sshll.u32 %s358_s24, 4  ;;  %s1135_s11 = sshll.u32 (!%p368_p3), %s1535_s22, 2  ;;  %s361_s26 = int_to_ptr.hbm [resolvable:$true] %s360_s26 }
  0x1f   : > { %1194 = dma.hbm_to_vmem [thread:$0]  (!%p1192_p0), %s361_s26, 64, %s363_s13, %s350_s20  }
  0x20   : > { %s374_s30 = scalar_lea.sflag (!%p368_p3), [#allocation7], %s1535_s22  ;;  %s377_s21 = scalar_lea.vmem (!%p368_p3), [#allocation6], %s1135_s11 }
  0x22   : > { %1369 = dma.done.wait (%p1508_p8), %s374_s30, 64  }
  0x23   : > { %1371 = vsyncadd (%p1508_p8), %s374_s30, 4294967232  ;;  %p422_p4 = scmp.lt.s32.totalorder %s1390_s16, 1  ;;  %v1182_v0 = vld [vmem:[%s1738_s2 + $0x8] sm:$0xff]  ;;  %v1181_v2 = vld [vmem:[%s1738_s2] sm:$0xff]  ;;  %vm455_vm0 = vcmask 261120   ;;  %vm485_vm1 = vcmask 64512  }
  0x24   : > { %v1184_v1 = vld [vmem:[%s1740_s4 + $0x8] sm:$0xff]  ;;  %465 = vmatpush.bf16.msra.mxu0 %v1182_v0  ;;  %v1183_v3 = vld [vmem:[%s1740_s4] sm:$0xff]  ;;  %vm474_vm2 = vcmask 257024   ;;  %s1400_s1 = smov 104   ;;  %vm476_vm3 = vcmask 7168   ;;  %v1403_v39 = vmov -inf  }
  0x25   : > { %s423_s13 = scalar_select %p422_p4, %s1390_s16, 1  ;;  %521 = vmatpush.bf16.msra.mxu1 %v1184_v1  ;;  %v490_v5 = vld [vmem:[%s377_s21] sm:$0xf]  ;;  %v1258_v6 = vld [vmem:[%s1739_s3] ss:$0 sm:$0xff]  ;;  %478 = vst.msk [vmem:[#allocation3 + $0x8] sm:$0xff] %vm476_vm3, %v1403_v39 }
  0x26   : > { %v1259_v7 = vld [vmem:[%s1741_s5] ss:$0 sm:$0xff]  ;;  %s1401_s21 = smov 120   ;;  %v1186_v30 = vld [vmem:[%s1742_s6 + $0x8] sm:$0xff]  ;;  %477 = vst.msk [vmem:[#allocation3] sm:$0xff] %vm476_vm3, %v1403_v39  ;;  %v1404_v50 = vmov 0  }
  0x27   : > { %s1137_s19 = sshll.u32 %s423_s13, 2  ;;  %555 = vmatpush.bf16.msra.mxu2 %v1186_v30  ;;  %v1185_v38 = vld [vmem:[%s1742_s6] sm:$0xff]  ;;  %479 = vst.msk [vmem:[#allocation3 + $0x10] sm:$0xff] %vm476_vm3, %v1403_v39  ;;  %1255 = vset.pattern.permute.xlu2 %v1404_v50  ;;  %v1405_v51 = vmov 0.0   ;;  %vm619_vm4 = vcmask 1043456   ;;  %s1136_s11 = sshll.u32 %s1535_s22, 3 }
  0x28   : > { %s428_s23 = scalar_lea.vmem %s1736_s0, %s1137_s19  ;;  %466 = vmatpush.bf16.msra.mxu0 %v1181_v2  ;;  %s1402_s19 = smov 112   ;;  %480 = vst.msk [vmem:[#allocation3 + $0x18] sm:$0xff] %vm476_vm3, %v1403_v39  ;;  %1256 = vset.pattern.permute.xlu0 %v1404_v50  ;;  %v1260_v59 = vld [vmem:[%s1743_s7] ss:$0 sm:$0xff] }
  0x29   : > { %522 = vmatpush.bf16.msra.mxu1 %v1183_v3  ;;  %v434_v4 = vld [vmem:[%s428_s23] sm:$0xf]  ;;  %1257 = vset.pattern.permute.xlu1 %v1404_v50  ;;  %489 = vst.msk [vmem:[#allocation5 + $0x18] sm:$0xff] %vm485_vm1, %v1405_v51  ;;  %s1178_s30 = sshll.u32 %s1390_s16, 3  ;;  %s421_s12 = scalar_lea.vmem [#allocation9], %s1136_s11 }
  0x2a   : > { %481 = vst.msk [vmem:[#allocation4] sm:$0xff] %vm476_vm3, %v1405_v51  ;;  %s1025_s26 = scalar_lea.hbm %s1746_s10, %s1178_s30  ;;  %s1336_s11 = scalar_lea.hbm %s1746_s10, 16 }
  0x2b   : > { %1146 = vmatmul.msk.bf16.vlgmr.msra.gmra.mxu0 %vm455_vm0, %v434_v4  ;;  %556 = vmatpush.bf16.msra.mxu2 %v1185_v38  ;;  %482 = vst.msk [vmem:[#allocation4 + $0x8] sm:$0xff] %vm476_vm3, %v1405_v51 }
  0x2c   : > { %1155 = vmatmul.msk.bf16.vlgmr.msra.gmra.mxu1 %vm455_vm0, %v490_v5  ;;  %483 = vst.msk [vmem:[#allocation4 + $0x10] sm:$0xff] %vm476_vm3, %v1405_v51  ;;  %v1611_v54 = vld [vmem:[#allocation3 + $0x8] sm:$0xff] }
  0x2d   : > { %484 = vst.msk [vmem:[#allocation4 + $0x18] sm:$0xff] %vm476_vm3, %v1405_v51  ;;  %v1621_v58 = vld [vmem:[#allocation3] sm:$0xff] }
  0x2e   : > { %1164 = vmatmul.msk.bf16.vlgmr.msra.gmra.mxu2 %vm455_vm0, %v490_v5  ;;  %486 = vst.msk [vmem:[#allocation5] sm:$0xff] %vm485_vm1, %v1405_v51 }
  0x2f   : > { %487 = vst.msk [vmem:[#allocation5 + $0x8] sm:$0xff] %vm485_vm1, %v1405_v51  ;;  %v828_v0 = vld [vmem:[#allocation3 + $0x18] sm:$0xff] }
  0x30   : > { %488 = vst.msk [vmem:[#allocation5 + $0x10] sm:$0xff] %vm485_vm1, %v1405_v51 }
  0x32   : > { %v679_v51 = vld [vmem:[#allocation4 + $0x8] sm:$0xff] }
  0x34   : > { %v845_v50 = vld [vmem:[#allocation4 + $0x18] sm:$0xff] }
  0xa8   : > { %v468_v8 = vpop.f32.mrf.mxu0 }
  0xa9   : > { %v524_v9 = vpop.f32.mrf.mxu1  ;;  %v469_v10 = vadd.f32 %v1258_v6, %v468_v8  ;;  %v745_v6 = vld [vmem:[#allocation3 + $0x10] sm:$0xff] }
  0xaa   : > { %v525_v11 = vadd.f32 %v1259_v7, %v524_v9 }
  0xab   : > { %v472_v12 = vmul.f32 0.35355338, %v469_v10 }
  0xac   : > { %v528_v13 = vpack.c.bf16 %v525_v11, %v525_v11 }
  0xad   : > { %v473_v14 = vpack.c.bf16 %v472_v12, %v472_v12 }
  0xae   : > { %v569_v15 = vsel %vm485_vm1, %v528_v13, 0  ;;  %v721_v26 = vunpack.c.l.b16 %v528_v13 }
  0xaf   : > { %578 = vmatpush.bf16.xpose.msra.mxu3 %v569_v15  ;;  %655 = vmatpush.bf16.xpose.msrb.mxu1 %v569_v15  ;;  %475 = vst.msk [vmem:[#allocation2] sm:$0xf] %vm474_vm2, %v473_v14 }
  0xb0   : > { %v470_v16 = vpop.f32.mrf.mxu0  ;;  %v722_v28 = vpack.c.b16 %v721_v26, %v721_v26 }
  0xb1   : > { %v526_v17 = vpop.f32.mrf.mxu1  ;;  %v558_v52 = vpop.f32.mrf.mxu2 }
  0xb2   : > { %v559_v63 = vadd.f32 %v1260_v59, %v558_v52 }
  0xb4   : > { %v562_v1 = vpack.c.bf16 %v559_v63, %v559_v63 }
  0xb6   : > { %v563_v18 = vld [vmem:[#allocation2] sm:$0xf]  ;;  %v779_v5 = vunpack.c.l.b16 %v562_v1  ;;  %v621_v15 = vsel %vm619_vm4, %v562_v1, 0 }
  0xb7   : > { %v805_v19 = vld [vmem:[#allocation2] sm:$0xf]  ;;  %1165 = vmatmul.msk.bf16.vlgmr.msra.gmra.mxu3 %vm485_vm1, %v563_v18  ;;  %705 = vmatpush.bf16.msrb.mxu2 %v621_v15 }
  0xb8   : > { %v639_v20 = vld [vmem:[#allocation2] sm:$0xf]  ;;  %v807_v21 = vunpack.c.l.b16 %v805_v19  ;;  %v780_v9 = vpack.c.b16 %v779_v5, %v779_v5  ;;  %630 = vmatpush.bf16.msrb.mxu0 %v621_v15  ;;  %v762_v15 = vld [vmem:[#allocation4 + $0x10] sm:$0xff] }
  0xb9   : > { %v641_v22 = vunpack.c.l.b16 %v639_v20  ;;  %v714_v25 = vld [vmem:[#allocation2] sm:$0xf]  ;;  %v560_v53 = vpop.f32.mrf.mxu2 }
  0xba   : > { %v808_v23 = vpack.c.b16 %v807_v21, %v807_v21  ;;  %v716_v27 = vunpack.c.l.b16 %v714_v25 }
  0xbb   : > { %v642_v24 = vpack.c.b16 %v641_v22, %v641_v22 }
  0xbc   : > { %809 = vrot.lane.b32.xlu1 %v808_v23, %s1400_s1  ;;  %v717_v29 = vpack.c.b16 %v716_v27, %v716_v27  ;;  %s1027_s1 = sshll.u32 %s421_s12, 4  ;;  %s1028_s1 = int_to_ptr.vmem [resolvable:$true] %s1027_s1 }
  0xbd   : > { %643 = vrot.lane.b32.xlu0 %v642_v24, %s1401_s21 }
  0xc4   : > { %718 = vrot.lane.b32.xlu1 %v717_v29, %s1402_s19  ;;  %s1014_s19 = scalar_lea.sflag [#allocation8], %s1535_s22 }
  0xc5   : > { %723 = vrot.lane.b32.xlu0 %v722_v28, %s1401_s21 }
 0x12e   : > { %v810_v32 = vpop.permute.xlu1 %809 }
 0x12f   : > { %v644_v31 = vpop.permute.xlu0 %643 }
 0x130   : > { %1167 = vmatmul.msk.bf16.vlgmr.msrb.gmra.mxu1 %vm485_vm1, %v644_v31 }
 0x136   : > { %v719_v36 = vpop.permute.xlu1 %718 }
 0x137   : > { %v724_v33 = vpop.permute.xlu0 %723 }
 0x138   : > { %v729_v34 = vsel %vm485_vm1, %v724_v33, 0 }
 0x139   : > { %738 = vmatpush.bf16.xpose.msrb.mxu3 %v729_v34  ;;  %821 = vmatpush.bf16.xpose.msra.mxu1 %v729_v34 }
 0x13a   : > { %v1577_v35 = vpop.f32.mrf.mxu3 }
 0x13b   : > { %v585_v43 = vsel %vm485_vm1, %v1577_v35, -inf }
 0x140   : > { %1169 = vmatmul.msk.bf16.vlgmr.msrb.gmra.mxu3 %vm485_vm1, %v719_v36  ;;  %1171 = vmatmul.msk.bf16.vlgmr.msra.gmra.mxu1 %vm485_vm1, %v810_v32 }
 0x142   : > { %v582_v37 = vpop.f32.mrf.mxu3 }
 0x1ad   : > { %v1586_v40 = vpop.f32.mrf.mxu1 }
 0x1ae   : > { %v663_v41 = vsel %vm485_vm1, %v1586_v40, -inf }
 0x1af   : > { %664 = vmax.xlane.f32.xlu2 %v663_v41 }
 0x1b5   : > { %v659_v42 = vpop.f32.mrf.mxu1 }
 0x1b7   : > { %586 = vmax.xlane.f32.xlu2 %v585_v43 }
 0x1bd   : > { %v1595_v44 = vpop.f32.mrf.mxu1 }
 0x1be   : > { %v829_v45 = vsel %vm485_vm1, %v1595_v44, -inf }
 0x1bf   : > { %830 = vmax.xlane.f32.xlu0 %v829_v45 }
 0x1c3   : > { %v1599_v46 = vpop.f32.mrf.mxu3 }
 0x1c4   : > { %v746_v47 = vsel %vm485_vm1, %v1599_v46, -inf }
 0x1c5   : > { %v825_v48 = vpop.f32.mrf.mxu1  ;;  %747 = vmax.xlane.f32.xlu1 %v746_v47  ;;  %v600_v47 = vld [vmem:[#allocation4] sm:$0xff] }
 0x1cb   : > { %v742_v49 = vpop.f32.mrf.mxu3 }
 0x222   : > { %v665_v55 = vpop.xlane.xlu2 %664 }
 0x223   : > { %v1614_v56 = vmax.f32 %v1611_v54, %v665_v55 }
 0x225   : > { %v667_v57 = vsub.f32 %v1611_v54, %v1614_v56  ;;  %713 = vst.msk [vmem:[#allocation3 + $0x8] sm:$0xff] %vm476_vm3, %v1614_v56  ;;  %672 = vperm.xlu2 %1255, %v1614_v56  }
 0x227   : > { %v668_v36 = vmul.f32 1.442695, %v667_v57 }
 0x22a   : > { %v587_v60 = vpop.xlane.xlu2 %586 }
 0x22b   : > { %v1627_v61 = vmax.f32 %v1621_v58, %v587_v60 }
 0x22d   : > { %v589_v62 = vsub.f32 %v1621_v58, %v1627_v61  ;;  %638 = vst.msk [vmem:[#allocation3] sm:$0xff] %vm476_vm3, %v1627_v61  ;;  %594 = vperm.xlu2 %1255, %v1627_v61   ;;  %v687_v61 = vld [vmem:[#allocation5 + $0x8] sm:$0xff] }
 0x232   : > { %v831_v2 = vpop.xlane.xlu0 %830 }
 0x233   : > { %v832_v3 = vmax.f32 %v828_v0, %v831_v2 }
 0x235   : > { %v833_v4 = vsub.f32 %v828_v0, %v832_v3  ;;  %879 = vst.msk [vmem:[#allocation3 + $0x18] sm:$0xff] %vm476_vm3, %v832_v3  ;;  %838 = vperm.xlu2 %1255, %v832_v3  }
 0x237   : > { %v834_v7 = vmul.f32 1.442695, %v833_v4 }
 0x238   : > { %v748_v8 = vpop.xlane.xlu1 %747 }
 0x239   : > { %v749_v10 = vmax.f32 %v745_v6, %v748_v8  ;;  %1262 = vpow2.f32 %v834_v7 }
 0x23b   : > { %804 = vst.msk [vmem:[#allocation3 + $0x10] sm:$0xff] %vm476_vm3, %v749_v10  ;;  %755 = vperm.xlu0 %1256, %v749_v10   ;;  %v750_v11 = vsub.f32 %v745_v6, %v749_v10  ;;  %v853_v6 = vld [vmem:[#allocation5 + $0x18] sm:$0xff] }
 0x23d   : > { %781 = vrot.lane.b32.xlu2 %v780_v9, %s1401_s21  ;;  %v751_v12 = vmul.f32 1.442695, %v750_v11  ;;  %s1029_s21 = sshll.u32 %s1025_s26, 4  ;;  %s1030_s21 = int_to_ptr.hbm [resolvable:$true] %s1029_s21 }
 0x23e   : > { %s1330_s24 = sshra.s32 %s1030_s21, 4  ;;  %s1331_s24 = int_to_ptr.hbm [resolvable:$true] %s1330_s24 }
 0x23f   : > { %v1637_v13 = vpop.eup %1262  ;;  %1264 = vpow2.f32 %v751_v12  ;;  %s1332_s16 = scalar_lea.hbm %s1331_s24, 8  ;;  %p1337_p8 = scmp.lt.s32.totalorder %s1331_s24, %s1746_s10 }
 0x240   : > { %v846_v52 = vmul.f32 %v1637_v13, %v845_v50  ;;  %p1333_p5 = scmp.ne.s32.totalorder %s1331_s24, %s1332_s16  ;;  %p1338_p10 = scmp.lt.s32.totalorder %s1336_s11, %s1332_s16 }
 0x242   : > { %p1334_p6 = pnand %p1333_p5, %p1512_p9  ;;  %p1339_p13 = por %p1338_p10, %p1337_p8 }
 0x243   : > { %856 = vperm.xlu0 %1256, %v1637_v13  }
 0x244   : > { %p1335_p7 = pneg %p1334_p6 }
 0x245   : > { %v1640_v14 = vpop.eup %1264 }
 0x246   : > { %p1340_p0 = pnand %p1339_p13, %p1335_p7 }
 0x24b   : > { %773 = vperm.xlu0 %1256, %v1640_v14  }
 0x27f   : > { %v673_v16 = vpop.permute.xlu2 %672 }
 0x280   : > { %v675_v17 = vsub.f32 %v1586_v40, %v673_v16  ;;  %v763_v16 = vmul.f32 %v1640_v14, %v762_v15 }
 0x282   : > { %v676_v18 = vmul.f32 1.442695, %v675_v17 }
 0x284   : > { %1266 = vpow2.f32 %v676_v18 }
 0x287   : > { %v595_v19 = vpop.permute.xlu2 %594 }
 0x288   : > { %v597_v20 = vsub.f32 %v1577_v35, %v595_v19  ;;  %v770_v19 = vld [vmem:[#allocation5 + $0x10] sm:$0xff] }
 0x28a   : > { %v1267_v21 = vpop.eup %1266  ;;  %v598_v22 = vmul.f32 1.442695, %v597_v20 }
 0x28b   : > { %v694_v23 = vpack.c.bf16 %v1267_v21, %v1267_v21  ;;  %v681_v35 = vsel %vm485_vm1, %v1267_v21, 0.0 }
 0x28c   : > { %1268 = vpow2.f32 %v598_v22 }
 0x28d   : > { %1168 = vmatmul.msk.bf16.vlgmr.msrb.gmra.mxu2 %vm485_vm1, %v694_v23 }
 0x28f   : > { %v839_v24 = vpop.permute.xlu2 %838 }
 0x290   : > { %v841_v25 = vsub.f32 %v1595_v44, %v839_v24  ;;  %v590_v44 = vmul.f32 1.442695, %v589_v62 }
 0x292   : > { %v1269_v26 = vpop.eup %1268  ;;  %v842_v27 = vmul.f32 1.442695, %v841_v25 }
 0x293   : > { %v602_v28 = vsel %vm485_vm1, %v1269_v26, 0.0  ;;  %v615_v29 = vpack.c.bf16 %v1269_v26, %v1269_v26 }
 0x294   : > { %1270 = vpow2.f32 %v842_v27  ;;  %603 = vadd.xlane.f32.xlu1 %v602_v28  ;;  %v608_v27 = vld [vmem:[#allocation5] sm:$0xff] }
 0x295   : > { %1166 = vmatmul.msk.bf16.vlgmr.msrb.gmra.mxu0 %vm485_vm1, %v615_v29  ;;  %1272 = vpow2.f32 %v668_v36  ;;  %v960_v36 = vld [vmem:[%s1744_s8 + $0x8] sm:$0xf] }
 0x297   : > { %v782_v30 = vpop.permute.xlu2 %781 }
 0x298   : > { %v787_v31 = vsel %vm619_vm4, %v782_v30, 0  ;;  %v898_v30 = vld [vmem:[%s1744_s8] sm:$0xf] }
 0x299   : > { %871 = vmatpush.bf16.msra.mxu2 %v787_v31  ;;  %796 = vmatpush.bf16.msra.mxu0 %v787_v31  ;;  %v903_v31 = vsel %vm619_vm4, %v898_v30, 0 }
 0x29a   : > { %v1271_v32 = vpop.eup %1270  ;;  %912 = vmatpush.bf16.msra.mxu3 %v903_v31 }
 0x29b   : > { %v860_v33 = vpack.c.bf16 %v1271_v32, %v1271_v32  ;;  %v847_v34 = vsel %vm485_vm1, %v1271_v32, 0.0  ;;  %v1273_v40 = vpop.eup %1272  ;;  %v929_v32 = vld [vmem:[%s1744_s8 + $0x4] sm:$0xf] }
 0x29c   : > { %848 = vadd.xlane.f32.xlu2 %v847_v34  ;;  %682 = vadd.xlane.f32.xlu1 %v681_v35  ;;  %v680_v53 = vmul.f32 %v1273_v40, %v679_v51  ;;  %v934_v34 = vsel %vm619_vm4, %v929_v32, 0 }
 0x29d   : > { %1172 = vmatmul.msk.bf16.vlgmr.msra.gmra.mxu2 %vm485_vm1, %v860_v33  ;;  %v991_v33 = vld [vmem:[%s1744_s8 + $0xc] sm:$0xf]  ;;  %943 = vmatpush.bf16.msrb.mxu0 %v934_v34 }
 0x29e   : > { %v996_v35 = vsel %vm619_vm4, %v991_v33, 0 }
 0x29f   : > { %1005 = vmatpush.bf16.msrb.mxu2 %v996_v35 }
 0x2ad   : > { %v756_v37 = vpop.permute.xlu0 %755 }
 0x2ae   : > { %v758_v38 = vsub.f32 %v1599_v46, %v756_v37  ;;  %v965_v37 = vsel %vm619_vm4, %v960_v36, 0 }
 0x2af   : > { %974 = vmatpush.bf16.msrb.mxu1 %v965_v37 }
 0x2b0   : > { %v759_v39 = vmul.f32 1.442695, %v758_v38 }
 0x2b2   : > { %1274 = vpow2.f32 %v759_v39 }
 0x2b3   : > { %1276 = vpow2.f32 %v590_v44 }
 0x2b4   : > { %690 = vperm.xlu2 %1255, %v1273_v40  }
 0x2b5   : > { %v857_v7 = vpop.permute.xlu0 %856 }
 0x2b6   : > { %v859_v8 = vmul.f32 %v857_v7, %v853_v6 }
 0x2b8   : > { %v1275_v41 = vpop.eup %1274 }
 0x2b9   : > { %v777_v42 = vpack.c.bf16 %v1275_v41, %v1275_v41  ;;  %v764_v43 = vsel %vm485_vm1, %v1275_v41, 0.0  ;;  %v1277_v45 = vpop.eup %1276 }
 0x2ba   : > { %765 = vadd.xlane.f32.xlu1 %v764_v43  ;;  %v601_v46 = vmul.f32 %v1277_v45, %v600_v47 }
 0x2bb   : > { %1170 = vmatmul.msk.bf16.vlgmr.msra.gmra.mxu0 %vm485_vm1, %v777_v42 }
 0x2bd   : > { %v774_v20 = vpop.permute.xlu0 %773 }
 0x2be   : > { %v776_v21 = vmul.f32 %v774_v20, %v770_v19 }
 0x2d3   : > { %611 = vperm.xlu1 %1257, %v1277_v45  }
 0x307   : > { %v604_v48 = vpop.xlane.xlu1 %603 }
 0x308   : > { %v605_v49 = vadd.f32 %v604_v48, %v601_v46 }
 0x30a   : > { %607 = vst.msk [vmem:[#allocation4] sm:$0xff] %vm476_vm3, %v605_v49 }
 0x30f   : > { %v849_v54 = vpop.xlane.xlu2 %848  ;;  %v683_v55 = vpop.xlane.xlu1 %682 }
 0x310   : > { %v850_v56 = vadd.f32 %v849_v54, %v846_v52  ;;  %v684_v57 = vadd.f32 %v683_v55, %v680_v53  ;;  %v707_v58 = vpop.f32.mrf.mxu2 }
 0x311   : > { %v888_v59 = vld [vmem:[#allocation4] sm:$0xff] }
 0x312   : > { %851 = vst.msk [vmem:[#allocation4 + $0x18] sm:$0xff] %vm476_vm3, %v850_v56  ;;  %v632_v60 = vpop.f32.mrf.mxu0  ;;  %1278 = vrcp.f32 %v888_v59 }
 0x313   : > { %685 = vst.msk [vmem:[#allocation4 + $0x8] sm:$0xff] %vm476_vm3, %v684_v57 }
 0x317   : > { %v691_v62 = vpop.permute.xlu2 %690 }
 0x318   : > { %v1279_v63 = vpop.eup %1278  ;;  %v693_v0 = vmul.f32 %v691_v62, %v687_v61  ;;  %v709_v1 = vpop.f32.mrf.mxu2 }
 0x319   : > { %893 = vperm.xlu1 %1257, %v1279_v63   ;;  %v981_v2 = vld [vmem:[#allocation4 + $0x18] sm:$0xff] }
 0x31a   : > { %v711_v3 = vadd.f32 %v707_v58, %v693_v0  ;;  %v634_v4 = vpop.f32.mrf.mxu0  ;;  %1280 = vrcp.f32 %v981_v2  ;;  %v919_v5 = vld [vmem:[#allocation4 + $0x8] sm:$0xff] }
 0x31b   : > { %1282 = vrcp.f32 %v919_v5 }
 0x31c   : > { %712 = vst.msk [vmem:[#allocation5 + $0x8] sm:$0xff] %vm485_vm1, %v711_v3 }
 0x320   : > { %v1281_v9 = vpop.eup %1280  ;;  %v873_v10 = vpop.f32.mrf.mxu2 }
 0x321   : > { %v1283_v11 = vpop.eup %1282  ;;  %v877_v12 = vadd.f32 %v873_v10, %v859_v8  ;;  %986 = vperm.xlu0 %1256, %v1281_v9  }
 0x322   : > { %924 = vperm.xlu1 %1257, %v1283_v11  }
 0x323   : > { %878 = vst.msk [vmem:[#allocation5 + $0x18] sm:$0xff] %vm485_vm1, %v877_v12  ;;  %v921_v45 = vld [vmem:[#allocation5 + $0x8] sm:$0xff] }
 0x328   : > { %v875_v13 = vpop.f32.mrf.mxu2 }
 0x32a   : > { %v983_v42 = vld [vmem:[#allocation5 + $0x18] sm:$0xff] }
 0x32d   : > { %v766_v17 = vpop.xlane.xlu1 %765 }
 0x32e   : > { %v767_v18 = vadd.f32 %v766_v17, %v763_v16 }
 0x330   : > { %768 = vst.msk [vmem:[#allocation4 + $0x10] sm:$0xff] %vm476_vm3, %v767_v18 }
 0x337   : > { %v950_v22 = vld [vmem:[#allocation4 + $0x10] sm:$0xff] }
 0x338   : > { %v798_v23 = vpop.f32.mrf.mxu0  ;;  %1284 = vrcp.f32 %v950_v22 }
 0x339   : > { %v802_v24 = vadd.f32 %v798_v23, %v776_v21 }
 0x33b   : > { %803 = vst.msk [vmem:[#allocation5 + $0x10] sm:$0xff] %vm485_vm1, %v802_v24 }
 0x33e   : > { %v1285_v25 = vpop.eup %1284 }
 0x33f   : > { %955 = vperm.xlu0 %1256, %v1285_v25  }
 0x340   : > { %v800_v26 = vpop.f32.mrf.mxu0 }
 0x342   : > { %v952_v50 = vld [vmem:[#allocation5 + $0x10] sm:$0xff] }
 0x345   : > { %v612_v28 = vpop.permute.xlu1 %611 }
 0x346   : > { %v614_v29 = vmul.f32 %v612_v28, %v608_v27 }
 0x348   : > { %v636_v14 = vadd.f32 %v632_v60, %v614_v29  ;;  %v1261_v60 = vld [vmem:[%s1745_s9] ss:$0 sm:$0xff] }
 0x34a   : > { %637 = vst.msk [vmem:[#allocation5] sm:$0xff] %vm485_vm1, %v636_v14 }
 0x351   : > { %v890_v38 = vld [vmem:[#allocation5] sm:$0xff] }
 0x38b   : > { %v894_v39 = vpop.permute.xlu1 %893 }
 0x38c   : > { %v896_v40 = vmul.f32 %v894_v39, %v890_v38 }
 0x38e   : > { %v897_v41 = vpack.c.bf16 %v896_v40, %v896_v40 }
 0x390   : > { %1173 = vmatmul.msk.bf16.vlgmr.msra.gmra.mxu3 %vm485_vm1, %v897_v41 }
 0x393   : > { %v987_v43 = vpop.permute.xlu0 %986 }
 0x394   : > { %v989_v44 = vmul.f32 %v987_v43, %v983_v42  ;;  %v925_v47 = vpop.permute.xlu1 %924 }
 0x395   : > { %v927_v46 = vmul.f32 %v925_v47, %v921_v45 }
 0x396   : > { %v990_v48 = vpack.c.bf16 %v989_v44, %v989_v44 }
 0x397   : > { %v928_v49 = vpack.c.bf16 %v927_v46, %v927_v46 }
 0x398   : > { %1176 = vmatmul.msk.bf16.vlgmr.msrb.gmra.mxu2 %vm485_vm1, %v990_v48 }
 0x399   : > { %1174 = vmatmul.msk.bf16.vlgmr.msrb.gmra.mxu0 %vm485_vm1, %v928_v49 }
 0x3b1   : > { %v956_v51 = vpop.permute.xlu0 %955 }
 0x3b2   : > { %v958_v52 = vmul.f32 %v956_v51, %v952_v50 }
 0x3b4   : > { %v959_v53 = vpack.c.bf16 %v958_v52, %v958_v52 }
 0x3b6   : > { %1175 = vmatmul.msk.bf16.vlgmr.msrb.gmra.mxu1 %vm485_vm1, %v959_v53 }
 0x413   : > { %v914_v54 = vpop.f32.mrf.mxu3 }
 0x414   : > { %v918_v61 = vadd.f32 %v1261_v60, %v914_v54 }
 0x416   : > { %v945_v55 = vpop.f32.mrf.mxu0 }
 0x417   : > { %v949_v62 = vadd.f32 %v945_v55, %v918_v61 }
 0x41b   : > { %v916_v56 = vpop.f32.mrf.mxu3  ;;  %v1007_v57 = vpop.f32.mrf.mxu2 }
 0x41e   : > { %v947_v58 = vpop.f32.mrf.mxu0 }
 0x423   : > { %v1009_v59 = vpop.f32.mrf.mxu2 }
 0x433   : > { %v976_v63 = vpop.f32.mrf.mxu1 }
 0x434   : > { %v980_v0 = vadd.f32 %v976_v63, %v949_v62 }
 0x436   : > { %v1011_v1 = vadd.f32 %v1007_v57, %v980_v0 }
 0x438   : > { %1012 = vst.msk [vmem:[%s421_s12] sm:$0xff] %vm455_vm0, %v1011_v1 }
 0x439   : > { %1343 = shalt.err (!%p1340_p0)
}
 0x43a   : > { %1189 = dma.vmem_to_hbm [thread:$0]  (%p1512_p9), %s1028_s1, 128, %s1030_s21, %s1014_s19  }
 0x43b   : > { %v978_v2 = vpop.f32.mrf.mxu1 }
 0x43c PF: > { %s1761_s22 = sld [smem:[#allocation12_spill]]  ;;  %p1196_p1 = pnand %p1131_p12, %p1519_p11 }
 0x43e   : > { %p1197_p2 = pneg %p1196_p1 }
 0x442   : > { %s1041_s13 = sand.u32 1, %s1761_s22  }
 0x443   : > { %s1042_s26 = scalar_lea.sflag [#allocation8], %s1041_s13 }
 0x444   : > { %1373 = dma.done.wait (%p1197_p2), %s1042_s26, 128  }
 0x445   : > { %1375 = vsyncadd (%p1197_p2), %s1042_s26, 4294967168  ;;  %s26_s18 = sadd.s32 1, %s1398_s18   ;;  %s1762_s29 = sld [smem:[#allocation13_spill]] }
 0x446   : > { %p23_p3 = scmp.ge.s32.totalorder %s26_s18, 4   ;;  %s1763_s13 = smov %s1382_s14 }
 0x447   : > { %s1764_s14 = smov %s1386_s15  ;;  %s1765_s15 = smov %s1517_s27 }
 0x448   : > { %s1766_s16 = smov %s1394_s17  ;;  %25 = sbr.rel (!%p23_p3) target bundleno = 8 (0x8), region = 125 }
 0x44b   : > { %s1767_s17 = smov %s1762_s29 }
 0x44d   :  { %1048 = vsyncpa [#allocation7], 1 }
 0x44e   :  { %1050 = vsyncpa [#allocation7 + $0x1], 1 }
 0x44f   :  { %1051 = vsyncpa [#allocation8], 1 }
 0x450   :  { %1053 = vsyncpa [#allocation8 + $0x1], 1 }

</bundles_post_ra>
